<compile_context>
chip_gen: v7x
topology: tpu7x:2x2x1
jax: 0.10.0
libtpu: 0.0.40
codegen_flags: <defaults>
</compile_context>

<pallas_src>
import functools

import jax
import jax.numpy as jnp
from jax.experimental import pallas as pl
from jax.experimental.pallas import tpu as pltpu


def _lstm_kernel(x_ref,      # (T_CHUNK, B_CHUNK, D)  bf16, streamed time chunk
                 w_x_ref,    # (D, 4H) bf16 fused [0.5*W_ii | 0.5*W_if | W_ig | 0.5*W_io]
                 w_h_ref,    # (H, 4H) bf16 fused [0.5*W_hi | 0.5*W_hf | W_hg | 0.5*W_ho]
                 b_ref,      # (1, 4H) f32  fused, sigmoid-gate blocks pre-scaled by 0.5
                 hc_ref,     # (B_CHUNK, 2H) f32 fused output [h_T | c_T]
                 h_sc,       # (B_CHUNK, H) f32 persistent carry
                 c_sc):      # (B_CHUNK, H) f32 persistent carry
    t_blk = pl.program_id(1)
    t_chunk = x_ref.shape[0]
    H = h_sc.shape[1]

    # Fresh batch tile: zero the carried state (matches zero initial states).
    @pl.when(t_blk == 0)
    def _():
        h_sc[...] = jnp.zeros_like(h_sc)
        c_sc[...] = jnp.zeros_like(c_sc)

    w_x = w_x_ref[...]      # keep packed weights resident in vregs
    w_h = w_h_ref[...]
    bias = b_ref[...]       # (1, 4H) f32

    # --- Chunk input projection: independent of h, so off the serial chain.
    # One small MXU matmul per time slice; the LLO scheduler hides these under
    # the recurrent dependency chain of the (fully unrolled) loop below.
    xproj = [
        jnp.dot(x_ref[i], w_x, preferred_element_type=jnp.float32) + bias
        for i in range(t_chunk)
    ]

    h = h_sc[...]
    c = c_sc[...]
    # t_chunk is small and static -> full unroll gives the scheduler
    # cross-step visibility (EUP tanh of step t overlaps MXU of step t+1).
    for i in range(t_chunk):
        # (B_CHUNK, 4H) fused pre-activations; sigmoid columns already *0.5.
        z = xproj[i] + jnp.dot(h.astype(jnp.bfloat16), w_h,
                               preferred_element_type=jnp.float32)
        tz = jnp.tanh(z)              # one lane-dense EUP tanh for all gates
        s = 0.5 * tz + 0.5            # sigmoid(v) = 0.5*tanh(0.5*v) + 0.5
        i_t = s[:, 0 * H:1 * H]
        f_t = s[:, 1 * H:2 * H]
        g_t = tz[:, 2 * H:3 * H]
        o_t = s[:, 3 * H:4 * H]
        c = f_t * c + i_t * g_t
        h = o_t * jnp.tanh(c)

    h_sc[...] = h
    c_sc[...] = c

    # Only the final time chunk of each batch tile writes the output block.
    @pl.when(t_blk == pl.num_programs(1) - 1)
    def _():
        hc_ref[:, :H] = h
        hc_ref[:, H:] = c


@functools.partial(jax.jit, static_argnames=("t_chunk", "b_chunk"))
def lstm_forward(x, params, *, t_chunk=4, b_chunk=None):
    """x: (batch, seq, feature) float32.  Returns (h_T, c_T), each (batch, hidden)."""
    B, T, D = x.shape
    H = params["W_hi"].shape[0]

    # ---- Static tiling choices (trace-time Python).
    t_chunk = max(1, min(t_chunk, T))
    while T % t_chunk:            # pick a divisor of T
        t_chunk -= 1
    if b_chunk is None:
        # Two batch tiles when possible -> "parallel" axis usable by v7x's 2 TCs.
        b_chunk = B // 2 if (B % 16 == 0 and B >= 16) else B
    if B % b_chunk or (b_chunk % 8 and b_chunk != B):
        b_chunk = B               # fall back to a single full-batch tile
    nb, nt = B // b_chunk, T // t_chunk

    # ---- Parameter packing (one-time glue, same math). Gate order [i, f, g, o].
    # Sigmoid-gate blocks are pre-scaled by 0.5 so the kernel's slab-wide tanh
    # implements sigmoid via 0.5*tanh(0.5*z)+0.5 without a per-step multiply.
    # Weights are cast to bf16 for single-pass MXU; accumulation stays f32.
    w_x = jnp.concatenate(
        [0.5 * params["W_ii"], 0.5 * params["W_if"],
         params["W_ig"], 0.5 * params["W_io"]], axis=1).astype(jnp.bfloat16)   # (D, 4H)
    w_h = jnp.concatenate(
        [0.5 * params["W_hi"], 0.5 * params["W_hf"],
         params["W_hg"], 0.5 * params["W_ho"]], axis=1).astype(jnp.bfloat16)   # (H, 4H)
    b = jnp.concatenate(
        [0.5 * (params["b_ii"] + params["b_hi"]),
         0.5 * (params["b_if"] + params["b_hf"]),
         (params["b_ig"] + params["b_hg"]),
         0.5 * (params["b_io"] + params["b_ho"])]).reshape(1, 4 * H)           # (1, 4H) f32

    # Time-major so a contiguous (t_chunk, b_chunk, D) block is one time chunk;
    # bf16 halves the streamed HBM->VMEM bytes (matmul inputs are bf16 anyway).
    x_tm = jnp.transpose(x, (1, 0, 2)).astype(jnp.bfloat16)                    # (T, B, D)

    hc = pl.pallas_call(
        _lstm_kernel,
        out_shape=jax.ShapeDtypeStruct((B, 2 * H), jnp.float32),
        grid_spec=pltpu.PrefetchScalarGridSpec(
            num_scalar_prefetch=0,
            grid=(nb, nt),                                   # (batch tiles, time chunks)
            in_specs=[
                pl.BlockSpec((t_chunk, b_chunk, D), lambda b_i, t_i: (t_i, b_i, 0)),
                pl.BlockSpec((D, 4 * H), lambda b_i, t_i: (0, 0)),   # resident weights
                pl.BlockSpec((H, 4 * H), lambda b_i, t_i: (0, 0)),
                pl.BlockSpec((1, 4 * H), lambda b_i, t_i: (0, 0)),
            ],
            out_specs=pl.BlockSpec((b_chunk, 2 * H), lambda b_i, t_i: (b_i, 0)),
            scratch_shapes=[
                pltpu.VMEM((b_chunk, H), jnp.float32),       # h carry
                pltpu.VMEM((b_chunk, H), jnp.float32),       # c carry
            ],
        ),
        compiler_params=pltpu.CompilerParams(
            dimension_semantics=("parallel", "arbitrary"),   # batch || , time serial
            vmem_limit_bytes=32 * 1024 * 1024,
        ),
    )(x_tm, w_x, w_h, b)

    return hc[:, :H], hc[:, H:]


def init_lstm_params(key, input_size, hidden_size):
    """Deterministic init matching the module: xavier_uniform for 2-D weights,
    zeros for biases."""
    def xavier(k, fan_in, fan_out):
        bound = jnp.sqrt(6.0 / (fan_in + fan_out))
        return jax.random.uniform(k, (fan_in, fan_out), jnp.float32, -bound, bound)

    keys = jax.random.split(key, 8)
    params = {
        "W_ii": xavier(keys[0], input_size, hidden_size),
        "W_hi": xavier(keys[1], hidden_size, hidden_size),
        "W_if": xavier(keys[2], input_size, hidden_size),
        "W_hf": xavier(keys[3], hidden_size, hidden_size),
        "W_ig": xavier(keys[4], input_size, hidden_size),
        "W_hg": xavier(keys[5], hidden_size, hidden_size),
        "W_io": xavier(keys[6], input_size, hidden_size),
        "W_ho": xavier(keys[7], hidden_size, hidden_size),
    }
    for name in ["b_ii", "b_hi", "b_if", "b_hf", "b_ig", "b_hg", "b_io", "b_ho"]:
        params[name] = jnp.zeros((hidden_size,), jnp.float32)
    return params


def lstm_ref(x, params, matmul_dtype=jnp.float32):
    """Pure-JAX reference of the PyTorch forward (zero initial states).
    matmul_dtype lets us build a precision-matched (bf16-matmul) reference."""
    B, T, D = x.shape
    H = params["W_hi"].shape[0]

    def mm(a, w):
        return jnp.dot(a.astype(matmul_dtype), w.astype(matmul_dtype),
                       preferred_element_type=jnp.float32)

    h = jnp.zeros((B, H), jnp.float32)
    c = jnp.zeros((B, H), jnp.float32)
    for t in range(T):
        x_t = x[:, t, :]
        i_t = jax.nn.sigmoid(mm(x_t, params["W_ii"]) + params["b_ii"]
                             + mm(h, params["W_hi"]) + params["b_hi"])
        f_t = jax.nn.sigmoid(mm(x_t, params["W_if"]) + params["b_if"]
                             + mm(h, params["W_hf"]) + params["b_hf"])
        g_t = jnp.tanh(mm(x_t, params["W_ig"]) + params["b_ig"]
                       + mm(h, params["W_hg"]) + params["b_hg"])
        o_t = jax.nn.sigmoid(mm(x_t, params["W_io"]) + params["b_io"]
                             + mm(h, params["W_ho"]) + params["b_ho"])
        c = f_t * c + i_t * g_t
        h = o_t * jnp.tanh(c)
    return h, c


if __name__ == "__main__":
    # batch == hidden_size (the PyTorch module's h_0 shape quirk requires it).
    batch, seq, input_size, hidden_size = 32, 8, 16, 32

    key = jax.random.PRNGKey(0)
    k_x, k_p = jax.random.split(key)
    x = jax.random.normal(k_x, (batch, seq, input_size), jnp.float32)
    params = init_lstm_params(k_p, input_size, hidden_size)

    h_T, c_T = lstm_forward(x, params)
    jax.block_until_ready((h_T, c_T))

    assert h_T.shape == (batch, hidden_size) and c_T.shape == (batch, hidden_size)

    # Tight check against a precision-matched reference (bf16 matmul inputs,
    # f32 accumulate — same arithmetic as the kernel).
    h_bf, c_bf = lstm_ref(x, params, matmul_dtype=jnp.bfloat16)
    assert jnp.allclose(h_T, h_bf, atol=5e-3, rtol=5e-3)
    assert jnp.allclose(c_T, c_bf, atol=5e-3, rtol=5e-3)

    # Loose check against the pure-f32 reference (error bounded by bf16
    # rounding of the matmul inputs; accumulation stays f32).
    h_ref, c_ref = lstm_ref(x, params)
    assert jnp.allclose(h_T, h_ref, atol=5e-2, rtol=5e-2)
    assert jnp.allclose(c_T, c_ref, atol=5e-2, rtol=5e-2)

    print("KERNEL_OK")
</pallas_src>

<mosaic_0001>
module attributes {stable_mosaic.version = 11 : i64} {
  func.func @_lstm_kernel(%arg0: i32, %arg1: i32, %arg2: memref<4x16x16xbf16, #tpu.memory_space<vmem>>, %arg3: memref<16x128xbf16, #tpu.memory_space<vmem>>, %arg4: memref<32x128xbf16, #tpu.memory_space<vmem>>, %arg5: memref<1x128xf32, #tpu.memory_space<vmem>>, %arg6: memref<16x64xf32, #tpu.memory_space<vmem>>, %arg7: memref<16x32xf32, #tpu.memory_space<vmem>>, %arg8: memref<16x32xf32, #tpu.memory_space<vmem>>) attributes {dimension_semantics = [#tpu.dimension_semantics<parallel>, #tpu.dimension_semantics<arbitrary>], iteration_bounds = array<i64: 2, 2>, scalar_prefetch = 0 : i64, scratch_operands = 2 : i64, tpu.core_type = #tpu.core_type<tc>, window_params = [{transform_indices = @transform_0, window_bounds = array<i64: 4, 16, 16>}, {pipeline_mode = #tpu.pipeline_mode<synchronous>, transform_indices = @transform_1, window_bounds = array<i64: 16, 128>}, {pipeline_mode = #tpu.pipeline_mode<synchronous>, transform_indices = @transform_2, window_bounds = array<i64: 32, 128>}, {pipeline_mode = #tpu.pipeline_mode<synchronous>, transform_indices = @transform_3, window_bounds = array<i64: 1, 128>}, {transform_indices = @transform_4, window_bounds = array<i64: 16, 64>}]} {
    %c0_i32 = arith.constant 0 : i32
    %0 = arith.cmpi eq, %arg1, %c0_i32 : i32
    %1 = arith.extui %0 : i1 to i32
    %c0_i32_0 = arith.constant 0 : i32
    %2 = arith.cmpi ne, %1, %c0_i32_0 : i32
    scf.if %2 {
      %cst_39 = arith.constant 0.000000e+00 : f32
      %101 = vector.broadcast %cst_39 : f32 to vector<16x32xf32>
      %c0_40 = arith.constant 0 : index
      %c0_41 = arith.constant 0 : index
      %102 = vector.load %arg7[%c0_40, %c0_41] : memref<16x32xf32, #tpu.memory_space<vmem>>, vector<16x32xf32>
      tpu.vector_store %arg7[%c0_40, %c0_41], %101 {strides = array<i32>} : memref<16x32xf32, #tpu.memory_space<vmem>>, vector<16x32xf32>,
      %cst_42 = arith.constant 0.000000e+00 : f32
      %103 = vector.broadcast %cst_42 : f32 to vector<16x32xf32>
      %c0_43 = arith.constant 0 : index
      %c0_44 = arith.constant 0 : index
      %104 = vector.load %arg8[%c0_43, %c0_44] : memref<16x32xf32, #tpu.memory_space<vmem>>, vector<16x32xf32>
      tpu.vector_store %arg8[%c0_43, %c0_44], %103 {strides = array<i32>} : memref<16x32xf32, #tpu.memory_space<vmem>>, vector<16x32xf32>,
    } else {
    }
    %c0 = arith.constant 0 : index
    %c0_1 = arith.constant 0 : index
    %3 = vector.load %arg3[%c0, %c0_1] : memref<16x128xbf16, #tpu.memory_space<vmem>>, vector<16x128xbf16>
    %c0_2 = arith.constant 0 : index
    %c0_3 = arith.constant 0 : index
    %4 = vector.load %arg4[%c0_2, %c0_3] : memref<32x128xbf16, #tpu.memory_space<vmem>>, vector<32x128xbf16>
    %c0_4 = arith.constant 0 : index
    %c0_5 = arith.constant 0 : index
    %5 = vector.load %arg5[%c0_4, %c0_5] : memref<1x128xf32, #tpu.memory_space<vmem>>, vector<1x128xf32>
    %c0_6 = arith.constant 0 : index
    %c0_7 = arith.constant 0 : index
    %c0_8 = arith.constant 0 : index
    %6 = vector.load %arg2[%c0_6, %c0_7, %c0_8] : memref<4x16x16xbf16, #tpu.memory_space<vmem>>, vector<1x16x16xbf16>
    %7 = vector.shape_cast %6 : vector<1x16x16xbf16> to vector<16x16xbf16>
    %cst = arith.constant dense<0.000000e+00> : vector<16x128xf32>
    %8 = tpu.matmul %7, %3, %cst {dimension_numbers = #tpu.dot_dimension_numbers<[1], [0], [0], [1], [0, 0, 1, 1], [], []>} : vector<16x16xbf16>, vector<16x128xbf16>, vector<16x128xf32> -> vector<16x128xf32>
    %9 = vector.broadcast %5 : vector<1x128xf32> to vector<16x128xf32>
    %10 = arith.addf %8, %9 : vector<16x128xf32>
    %c1 = arith.constant 1 : index
    %c0_9 = arith.constant 0 : index
    %c0_10 = arith.constant 0 : index
    %11 = vector.load %arg2[%c1, %c0_9, %c0_10] : memref<4x16x16xbf16, #tpu.memory_space<vmem>>, vector<1x16x16xbf16>
    %12 = vector.shape_cast %11 : vector<1x16x16xbf16> to vector<16x16xbf16>
    %cst_11 = arith.constant dense<0.000000e+00> : vector<16x128xf32>
    %13 = tpu.matmul %12, %3, %cst_11 {dimension_numbers = #tpu.dot_dimension_numbers<[1], [0], [0], [1], [0, 0, 1, 1], [], []>} : vector<16x16xbf16>, vector<16x128xbf16>, vector<16x128xf32> -> vector<16x128xf32>
    %14 = vector.broadcast %5 : vector<1x128xf32> to vector<16x128xf32>
    %15 = arith.addf %13, %14 : vector<16x128xf32>
    %c2 = arith.constant 2 : index
    %c0_12 = arith.constant 0 : index
    %c0_13 = arith.constant 0 : index
    %16 = vector.load %arg2[%c2, %c0_12, %c0_13] : memref<4x16x16xbf16, #tpu.memory_space<vmem>>, vector<1x16x16xbf16>
    %17 = vector.shape_cast %16 : vector<1x16x16xbf16> to vector<16x16xbf16>
    %cst_14 = arith.constant dense<0.000000e+00> : vector<16x128xf32>
    %18 = tpu.matmul %17, %3, %cst_14 {dimension_numbers = #tpu.dot_dimension_numbers<[1], [0], [0], [1], [0, 0, 1, 1], [], []>} : vector<16x16xbf16>, vector<16x128xbf16>, vector<16x128xf32> -> vector<16x128xf32>
    %19 = vector.broadcast %5 : vector<1x128xf32> to vector<16x128xf32>
    %20 = arith.addf %18, %19 : vector<16x128xf32>
    %c3 = arith.constant 3 : index
    %c0_15 = arith.constant 0 : index
    %c0_16 = arith.constant 0 : index
    %21 = vector.load %arg2[%c3, %c0_15, %c0_16] : memref<4x16x16xbf16, #tpu.memory_space<vmem>>, vector<1x16x16xbf16>
    %22 = vector.shape_cast %21 : vector<1x16x16xbf16> to vector<16x16xbf16>
    %cst_17 = arith.constant dense<0.000000e+00> : vector<16x128xf32>
    %23 = tpu.matmul %22, %3, %cst_17 {dimension_numbers = #tpu.dot_dimension_numbers<[1], [0], [0], [1], [0, 0, 1, 1], [], []>} : vector<16x16xbf16>, vector<16x128xbf16>, vector<16x128xf32> -> vector<16x128xf32>
    %24 = vector.broadcast %5 : vector<1x128xf32> to vector<16x128xf32>
    %25 = arith.addf %23, %24 : vector<16x128xf32>
    %c0_18 = arith.constant 0 : index
    %c0_19 = arith.constant 0 : index
    %26 = vector.load %arg7[%c0_18, %c0_19] : memref<16x32xf32, #tpu.memory_space<vmem>>, vector<16x32xf32>
    %c0_20 = arith.constant 0 : index
    %c0_21 = arith.constant 0 : index
    %27 = vector.load %arg8[%c0_20, %c0_21] : memref<16x32xf32, #tpu.memory_space<vmem>>, vector<16x32xf32>
    %28 = arith.truncf %26 : vector<16x32xf32> to vector<16x32xbf16>
    %cst_22 = arith.constant dense<0.000000e+00> : vector<16x128xf32>
    %29 = tpu.matmul %28, %4, %cst_22 {dimension_numbers = #tpu.dot_dimension_numbers<[1], [0], [0], [1], [0, 0, 1, 1], [], []>} : vector<16x32xbf16>, vector<32x128xbf16>, vector<16x128xf32> -> vector<16x128xf32>
    %30 = arith.addf %10, %29 : vector<16x128xf32>
    %31 = math.tanh %30 : vector<16x128xf32>
    %cst_23 = arith.constant 5.000000e-01 : f32
    %32 = vector.broadcast %cst_23 : f32 to vector<16x128xf32>
    %33 = arith.mulf %32, %31 : vector<16x128xf32>
    %cst_24 = arith.constant 5.000000e-01 : f32
    %34 = vector.broadcast %cst_24 : f32 to vector<16x128xf32>
    %35 = arith.addf %33, %34 : vector<16x128xf32>
    %36 = vector.extract_strided_slice %35 {offsets = [0, 0], sizes = [16, 32], strides = [1, 1]} : vector<16x128xf32> to vector<16x32xf32>
    %37 = vector.extract_strided_slice %35 {offsets = [0, 32], sizes = [16, 32], strides = [1, 1]} : vector<16x128xf32> to vector<16x32xf32>
    %38 = vector.extract_strided_slice %31 {offsets = [0, 64], sizes = [16, 32], strides = [1, 1]} : vector<16x128xf32> to vector<16x32xf32>
    %39 = vector.extract_strided_slice %35 {offsets = [0, 96], sizes = [16, 32], strides = [1, 1]} : vector<16x128xf32> to vector<16x32xf32>
    %40 = arith.mulf %37, %27 : vector<16x32xf32>
    %41 = arith.mulf %36, %38 : vector<16x32xf32>
    %42 = arith.addf %40, %41 : vector<16x32xf32>
    %43 = math.tanh %42 : vector<16x32xf32>
    %44 = arith.mulf %39, %43 : vector<16x32xf32>
    %45 = arith.truncf %44 : vector<16x32xf32> to vector<16x32xbf16>
    %cst_25 = arith.constant dense<0.000000e+00> : vector<16x128xf32>
    %46 = tpu.matmul %45, %4, %cst_25 {dimension_numbers = #tpu.dot_dimension_numbers<[1], [0], [0], [1], [0, 0, 1, 1], [], []>} : vector<16x32xbf16>, vector<32x128xbf16>, vector<16x128xf32> -> vector<16x128xf32>
    %47 = arith.addf %15, %46 : vector<16x128xf32>
    %48 = math.tanh %47 : vector<16x128xf32>
    %cst_26 = arith.constant 5.000000e-01 : f32
    %49 = vector.broadcast %cst_26 : f32 to vector<16x128xf32>
    %50 = arith.mulf %49, %48 : vector<16x128xf32>
    %cst_27 = arith.constant 5.000000e-01 : f32
    %51 = vector.broadcast %cst_27 : f32 to vector<16x128xf32>
    %52 = arith.addf %50, %51 : vector<16x128xf32>
    %53 = vector.extract_strided_slice %52 {offsets = [0, 0], sizes = [16, 32], strides = [1, 1]} : vector<16x128xf32> to vector<16x32xf32>
    %54 = vector.extract_strided_slice %52 {offsets = [0, 32], sizes = [16, 32], strides = [1, 1]} : vector<16x128xf32> to vector<16x32xf32>
    %55 = vector.extract_strided_slice %48 {offsets = [0, 64], sizes = [16, 32], strides = [1, 1]} : vector<16x128xf32> to vector<16x32xf32>
    %56 = vector.extract_strided_slice %52 {offsets = [0, 96], sizes = [16, 32], strides = [1, 1]} : vector<16x128xf32> to vector<16x32xf32>
    %57 = arith.mulf %54, %42 : vector<16x32xf32>
    %58 = arith.mulf %53, %55 : vector<16x32xf32>
    %59 = arith.addf %57, %58 : vector<16x32xf32>
    %60 = math.tanh %59 : vector<16x32xf32>
    %61 = arith.mulf %56, %60 : vector<16x32xf32>
    %62 = arith.truncf %61 : vector<16x32xf32> to vector<16x32xbf16>
    %cst_28 = arith.constant dense<0.000000e+00> : vector<16x128xf32>
    %63 = tpu.matmul %62, %4, %cst_28 {dimension_numbers = #tpu.dot_dimension_numbers<[1], [0], [0], [1], [0, 0, 1, 1], [], []>} : vector<16x32xbf16>, vector<32x128xbf16>, vector<16x128xf32> -> vector<16x128xf32>
    %64 = arith.addf %20, %63 : vector<16x128xf32>
    %65 = math.tanh %64 : vector<16x128xf32>
    %cst_29 = arith.constant 5.000000e-01 : f32
    %66 = vector.broadcast %cst_29 : f32 to vector<16x128xf32>
    %67 = arith.mulf %66, %65 : vector<16x128xf32>
    %cst_30 = arith.constant 5.000000e-01 : f32
    %68 = vector.broadcast %cst_30 : f32 to vector<16x128xf32>
    %69 = arith.addf %67, %68 : vector<16x128xf32>
    %70 = vector.extract_strided_slice %69 {offsets = [0, 0], sizes = [16, 32], strides = [1, 1]} : vector<16x128xf32> to vector<16x32xf32>
    %71 = vector.extract_strided_slice %69 {offsets = [0, 32], sizes = [16, 32], strides = [1, 1]} : vector<16x128xf32> to vector<16x32xf32>
    %72 = vector.extract_strided_slice %65 {offsets = [0, 64], sizes = [16, 32], strides = [1, 1]} : vector<16x128xf32> to vector<16x32xf32>
    %73 = vector.extract_strided_slice %69 {offsets = [0, 96], sizes = [16, 32], strides = [1, 1]} : vector<16x128xf32> to vector<16x32xf32>
    %74 = arith.mulf %71, %59 : vector<16x32xf32>
    %75 = arith.mulf %70, %72 : vector<16x32xf32>
    %76 = arith.addf %74, %75 : vector<16x32xf32>
    %77 = math.tanh %76 : vector<16x32xf32>
    %78 = arith.mulf %73, %77 : vector<16x32xf32>
    %79 = arith.truncf %78 : vector<16x32xf32> to vector<16x32xbf16>
    %cst_31 = arith.constant dense<0.000000e+00> : vector<16x128xf32>
    %80 = tpu.matmul %79, %4, %cst_31 {dimension_numbers = #tpu.dot_dimension_numbers<[1], [0], [0], [1], [0, 0, 1, 1], [], []>} : vector<16x32xbf16>, vector<32x128xbf16>, vector<16x128xf32> -> vector<16x128xf32>
    %81 = arith.addf %25, %80 : vector<16x128xf32>
    %82 = math.tanh %81 : vector<16x128xf32>
    %cst_32 = arith.constant 5.000000e-01 : f32
    %83 = vector.broadcast %cst_32 : f32 to vector<16x128xf32>
    %84 = arith.mulf %83, %82 : vector<16x128xf32>
    %cst_33 = arith.constant 5.000000e-01 : f32
    %85 = vector.broadcast %cst_33 : f32 to vector<16x128xf32>
    %86 = arith.addf %84, %85 : vector<16x128xf32>
    %87 = vector.extract_strided_slice %86 {offsets = [0, 0], sizes = [16, 32], strides = [1, 1]} : vector<16x128xf32> to vector<16x32xf32>
    %88 = vector.extract_strided_slice %86 {offsets = [0, 32], sizes = [16, 32], strides = [1, 1]} : vector<16x128xf32> to vector<16x32xf32>
    %89 = vector.extract_strided_slice %82 {offsets = [0, 64], sizes = [16, 32], strides = [1, 1]} : vector<16x128xf32> to vector<16x32xf32>
    %90 = vector.extract_strided_slice %86 {offsets = [0, 96], sizes = [16, 32], strides = [1, 1]} : vector<16x128xf32> to vector<16x32xf32>
    %91 = arith.mulf %88, %76 : vector<16x32xf32>
    %92 = arith.mulf %87, %89 : vector<16x32xf32>
    %93 = arith.addf %91, %92 : vector<16x32xf32>
    %94 = math.tanh %93 : vector<16x32xf32>
    %95 = arith.mulf %90, %94 : vector<16x32xf32>
    %c0_34 = arith.constant 0 : index
    %c0_35 = arith.constant 0 : index
    %96 = vector.load %arg7[%c0_34, %c0_35] : memref<16x32xf32, #tpu.memory_space<vmem>>, vector<16x32xf32>
    tpu.vector_store %arg7[%c0_34, %c0_35], %95 {strides = array<i32>} : memref<16x32xf32, #tpu.memory_space<vmem>>, vector<16x32xf32>,
    %c0_36 = arith.constant 0 : index
    %c0_37 = arith.constant 0 : index
    %97 = vector.load %arg8[%c0_36, %c0_37] : memref<16x32xf32, #tpu.memory_space<vmem>>, vector<16x32xf32>
    tpu.vector_store %arg8[%c0_36, %c0_37], %93 {strides = array<i32>} : memref<16x32xf32, #tpu.memory_space<vmem>>, vector<16x32xf32>,
    %c1_i32 = arith.constant 1 : i32
    %98 = arith.cmpi eq, %arg1, %c1_i32 : i32
    %99 = arith.extui %98 : i1 to i32
    %c0_i32_38 = arith.constant 0 : i32
    %100 = arith.cmpi ne, %99, %c0_i32_38 : i32
    scf.if %100 {
      %c0_39 = arith.constant 0 : index
      %c0_40 = arith.constant 0 : index
      %101 = vector.load %arg6[%c0_39, %c0_40] : memref<16x64xf32, #tpu.memory_space<vmem>>, vector<16x32xf32>
      tpu.vector_store %arg6[%c0_39, %c0_40], %95 {strides = array<i32>} : memref<16x64xf32, #tpu.memory_space<vmem>>, vector<16x32xf32>,
      %c0_41 = arith.constant 0 : index
      %c32 = arith.constant 32 : index
      %102 = vector.load %arg6[%c0_41, %c32] : memref<16x64xf32, #tpu.memory_space<vmem>>, vector<16x32xf32>
      tpu.vector_store %arg6[%c0_41, %c32], %93 {strides = array<i32>} : memref<16x64xf32, #tpu.memory_space<vmem>>, vector<16x32xf32>,
    } else {
    }
    return
  }
  func.func @transform_0(%arg0: i32, %arg1: i32) -> (i32, i32, i32) {
    %c0_i32 = arith.constant 0 : i32
    %c0_i32_0 = arith.constant 0 : i32
    return %arg1, %arg0, %c0_i32 : i32, i32, i32
  }
  func.func @transform_1(%arg0: i32, %arg1: i32) -> (i32, i32) {
    %c0_i32 = arith.constant 0 : i32
    %c0_i32_0 = arith.constant 0 : i32
    %c0_i32_1 = arith.constant 0 : i32
    return %c0_i32, %c0_i32_0 : i32, i32
  }
  func.func @transform_2(%arg0: i32, %arg1: i32) -> (i32, i32) {
    %c0_i32 = arith.constant 0 : i32
    %c0_i32_0 = arith.constant 0 : i32
    %c0_i32_1 = arith.constant 0 : i32
    return %c0_i32, %c0_i32_0 : i32, i32
  }
  func.func @transform_3(%arg0: i32, %arg1: i32) -> (i32, i32) {
    %c0_i32 = arith.constant 0 : i32
    %c0_i32_0 = arith.constant 0 : i32
    %c0_i32_1 = arith.constant 0 : i32
    return %c0_i32, %c0_i32_0 : i32, i32
  }
  func.func @transform_4(%arg0: i32, %arg1: i32) -> (i32, i32) {
    %c0_i32 = arith.constant 0 : i32
    %c0_i32_0 = arith.constant 0 : i32
    return %arg0, %c0_i32 : i32, i32
  }
}

</mosaic_0001>

<bundles_post_ra>
// kernel: lstm_forward.1
= control target key start
LH: loop header
LB: loop body
LE: loop exit
PB: predicated region body
PF: predicated region fallthrough
CT: control target
= control target key end

     0   :  { %s1341_s15 = smov 0   ;;  %s1343_s16 = smov 0   ;;  %s1556_s0 = inlined_call_operand.vmem [shape: bf16[8,32,16], index: 0, kind: input, shape index: {}]   ;;  %s1557_s1 = inlined_call_operand.vmem [shape: bf16[16,128], index: 1, kind: input, shape index: {}]   ;;  %s1558_s2 = inlined_call_operand.vmem [shape: bf16[32,128], index: 2, kind: input, shape index: {}]   ;;  %s1559_s3 = inlined_call_operand.vmem [shape: f32[1,128], index: 3, kind: input, shape index: {}]   ;;  %s1560_s4 = inlined_call_operand.vmem [shape: f32[32,64], index: 4, kind: output, shape index: {}]  }
   0x1   :  { %s1345_s17 = smov 0   ;;  %s1347_s18 = smov 0  }
   0x2   :  { %s1349_s19 = smov 0   ;;  %s1351_s20 = smov 0  }
   0x3   :  { %s1353_s21 = smov 0  }
   0x4 LB: > { %s23_s22 = sadd.s32 1, %s1300_s19  ;;  %s26_s23 = sadd.s32 1, %s1304_s20  ;;  %s1308_s21 = sphi %s1353_s21, %s14_s21   ;;  %s1304_s20 = sphi %s1351_s20, %s1566_s20   ;;  %s1300_s19 = sphi %s1349_s19, %s1565_s19   ;;  %s1296_s18 = sphi %s1347_s18, %s1564_s18   ;;  %s1292_s17 = sphi %s1345_s17, %s1563_s17   ;;  %s1288_s16 = sphi %s1343_s16, %s1562_s16   ;;  %s1284_s15 = sphi %s1341_s15, %s1561_s15  }
   0x5   : > { %p24_p0 = scmp.ge.s32.totalorder %s23_s22, 2  ;;  %p42_p1 = scmp.ne.s32.totalorder %s1288_s16, %s1284_s15 }
   0x6   : > { %p43_p2 = scmp.eq.s32.totalorder %s1308_s21, 0  ;;  %s35_s27 = sadd.s32 1, %s1288_s16 }
   0x7   : > { %s1568_s22 = smov (%p24_p0, %s23_s22), 0  ;;  %s1570_s23 = smov (!%p24_p0, %s26_s23), %s1304_s20 }
   0x8   : > { %p44_p3 = por %p43_p2, %p42_p1  ;;  %p28_p4 = scmp.ge.s32.totalorder %s1570_s23, 2 }
   0x9   : > { %s30_s24 = ssub.s32 %s1300_s19, %s1568_s22  ;;  %p1016_p6 = scmp.ge.s32.totalorder %s1308_s21, 4 }
   0xa   : > { %s1572_s23 = smov (%p28_p4, %s1570_s23), 0 }
   0xb   : > { %s31_s25 = ssub.s32 %s1304_s20, %s1572_s23  ;;  %166 = sbr.rel (%p1016_p6) target bundleno = 27 (0x1b), region = 28 }
   0xc   : > { %s32_s26 = sor.u32 %s31_s25, %s30_s24 }
   0xd   : > { %p33_p5 = scmp.eq.s32.totalorder %s32_s26, 0 }
   0xf   : > { %s1392_s28 = scalar_select %p33_p5, %s1288_s16, %s35_s27  }
  0x12   : > { %169 = sbr.rel (!%p44_p3) target bundleno = 27 (0x1b), region = 32  ;;  %s171_s29 = sand.u32 (%p44_p3), 1, %s1288_s16  }
  0x13   : > { %s1019_s30 = sshll.u32 (%p44_p3), %s1304_s20, 1  ;;  %s1017_s5 = sshll.u32 (%p44_p3), %s171_s29, 5 }
  0x14   : > { %s1052_s6 = sshll.u32 (%p44_p3), %s1300_s19, 4  ;;  %s173_s12 = scalar_lea.vmem (%p44_p3), [#allocation4], %s1017_s5 }
  0x15   : > { %s177_s7 = sadd.s32 (%p44_p3), %s1052_s6, %s1019_s30 }
  0x16   : > { %s1021_s8 = sshll.u32 (%p44_p3), %s177_s7, 2 }
  0x17   : > { %s179_s11 = scalar_lea.vmem (%p44_p3), %s1556_s0, %s1021_s8 }
  0x18   : > { %v195_v0 = vld [vmem:[%s179_s11] sm:$0xff] (%p44_p3)   ;;  %v199_v1 = vld [vmem:[%s179_s11 + $0x10] sm:$0xff] (%p44_p3)  }
  0x19   : > { %v203_v2 = vld [vmem:[%s179_s11 + $0x20] sm:$0xff]   ;;  %196 = vst [vmem:[%s173_s12] sm:$0xff] %v195_v0   ;;  %200 = vst [vmem:[%s173_s12 + $0x8] sm:$0xff] %v199_v1   ;;  %v207_v3 = vld [vmem:[%s179_s11 + $0x30] sm:$0xff]  }
  0x1a   : > { %204 = vst [vmem:[%s173_s12 + $0x10] sm:$0xff] %v203_v2   ;;  %208 = vst [vmem:[%s173_s12 + $0x18] sm:$0xff] %v207_v3  }
  0x1b PF: > { %p1022_p7 = scmp.ge.s32.totalorder %s1308_s21, 1  ;;  %p248_p8 = scmp.lt.s32.totalorder %s1308_s21, 5 }
  0x1d   : > { %p249_p9 = pnand %p1022_p7, %p248_p8 }
  0x1e   : > { %s255_s13 = sand.u32 (!%p249_p9), 1, %s1284_s15   ;;  %s1024_s14 = sshll.u32 (!%p249_p9), %s1296_s18, 1 }
  0x1f   : > { %252 = sbr.rel (%p249_p9) target bundleno = 2895 (0xb4f), region = 73  ;;  %s1023_s24 = sshll.u32 (!%p249_p9), %s255_s13, 5 }
  0x20   : > { %p283_p10 = scmp.lt.s32.totalorder (!%p249_p9), %s1024_s14, 3  ;;  %s1410_s30 = scalar_lea.vmem (!%p249_p9), [#allocation4], %s1023_s24 }
  0x21   : > { %p1026_p11 = scmp.ne.s32.totalorder (!%p249_p9), %s1292_s17, 0 }
  0x26   : > { %s1574_s14 = smov (!%p283_p10, %s1024_s14), 3  ;;  %292 = sbr.rel (%p1026_p11) target bundleno = 45 (0x2d), region = 81 }
  0x27   : > { %s1025_s25 = sshll.u32 %s1574_s14, 3  ;;  %vm293_vm0 = vcmask (!%p1026_p11), 261120   ;;  %v1310_v4 = vmov (!%p1026_p11), 0.0  }
  0x28   : > { %s1408_s29 = scalar_lea.vmem %s1560_s4, %s1025_s25  ;;  %294 = vst.msk [vmem:[#allocation2] sm:$0xff] (!%p1026_p11), %vm293_vm0, %v1310_v4  ;;  %295 = vst.msk [vmem:[#allocation2 + $0x8] sm:$0xff] (!%p1026_p11), %vm293_vm0, %v1310_v4 }
  0x29   : > { %296 = vst.msk [vmem:[#allocation3] sm:$0xff] (!%p1026_p11), %vm293_vm0, %v1310_v4  ;;  %297 = vst.msk [vmem:[#allocation3 + $0x8] sm:$0xff] (!%p1026_p11), %vm293_vm0, %v1310_v4 }
  0x2d PF: > { %v1416_v5 = vld [vmem:[%s1557_s1] sm:$0xff]   ;;  %v1311_v6 = vmov 0.0   ;;  %vm1312_vm1 = vmmov 0   ;;  %vm324_vm2 = vcmask 130048   ;;  %s1313_s5 = smov 32   ;;  %v1217_v10 = vld [vmem:[%s1410_s30 + $0x10] sm:$0xff]  }
  0x2e   : > { %1073 = vmatprep.subr.bf16.mxu0 %v1311_v6  ;;  %v1216_v7 = vld [vmem:[%s1410_s30] sm:$0xff]   ;;  %1079 = vmatprep.subr.bf16.mxu1 %v1311_v6  ;;  %v1447_v12 = vld [vmem:[%s1558_s2 + $0x8] sm:$0xff]   ;;  %vm542_vm3 = vcmask 261120   ;;  %s1314_s12 = smov 64   ;;  %v1221_v43 = vld [vmem:[%s1410_s30 + $0x18] sm:$0xff]   ;;  %s1315_s13 = smov 96  }
  0x2f   : > { %1074 = vmatpush3.bf16.msra.mxu0 %v1416_v5  ;;  %1075 = vmatprep.mubr.msk.bf16.mxu0 %vm1312_vm1, %v1311_v6  ;;  %v1439_v11 = vld [vmem:[%s1558_s2] sm:$0xff]   ;;  %v526_v14 = vld [vmem:[#allocation2 + $0x8] sm:$0xff]  ;;  %p1049_p12 = scmp.ne.s32.totalorder %s1292_s17, 1 }
  0x30   : > { %1085 = vmatprep.subr.bf16.mxu0 %v1311_v6  ;;  %1080 = vmatpush3.bf16.msra.mxu1 %v1416_v5  ;;  %v527_v8 = vld [vmem:[#allocation3] sm:$0xff]  ;;  %v528_v9 = vld [vmem:[#allocation3 + $0x8] sm:$0xff]  ;;  %v525_v13 = vld [vmem:[#allocation2] sm:$0xff]  ;;  %vm933_vm4 = vcmask (!%p1049_p12), 523520  }
  0x31   : > { %1081 = vmatprep.mubr.msk.bf16.mxu1 %vm1312_vm1, %v1311_v6  ;;  %1091 = vmatprep.subr.bf16.mxu1 %v1311_v6  ;;  %v529_v15 = vpack.c.bf16 %v526_v14, %v525_v13  ;;  %v1463_v16 = vld [vmem:[%s1559_s3] ss:$0 sm:$0xff]  ;;  %v1220_v41 = vld [vmem:[%s1410_s30 + $0x8] sm:$0xff]  }
  0x32   : > { %1076 = vmatmul.mubr.msk.bf16.vlgmr.msra.gmra.mrb[0].mxu0 %vm324_vm2, %v1216_v7  ;;  %597 = vrot.lane.b32.xlu1 %v527_v8, %s1313_s5 }
  0x33   : > { %1086 = vmatpush3.bf16.msra.mxu0 %v1416_v5  ;;  %1087 = vmatprep.mubr.msk.bf16.mxu0 %vm1312_vm1, %v1311_v6 }
  0x34   : > { %1097 = vmatprep.subr.bf16.mxu0 %v1311_v6  ;;  %1082 = vmatmul.mubr.msk.bf16.vlgmr.msra.gmra.mrb[0].mxu1 %vm324_vm2, %v1220_v41 }
  0x35   : > { %1092 = vmatpush3.bf16.msra.mxu1 %v1416_v5  ;;  %1093 = vmatprep.mubr.msk.bf16.mxu1 %vm1312_vm1, %v1311_v6 }
  0x36   : > { %599 = vrot.lane.b32.xlu1 %v528_v9, %s1313_s5  ;;  %1105 = vmatprep.subr.bf16.mxu1 %v1311_v6 }
  0x3a   : > { %1088 = vmatmul.mubr.msk.bf16.vlgmr.msra.gmra.mrb[4].mxu0 %vm324_vm2, %v1217_v10 }
  0x3b   : > { %1098 = vmatpush3.bf16.msra.mxu0 %v1439_v11  ;;  %1101 = vmatprep.mubr.msk.bf16.mxu0 %vm1312_vm1, %v1311_v6 }
  0x3c   : > { %1099 = vmatprep.subr.bf16.mxu0 %v1311_v6  ;;  %1094 = vmatmul.mubr.msk.bf16.vlgmr.msra.gmra.mrb[4].mxu1 %vm324_vm2, %v1221_v43 }
  0x3d   : > { %1106 = vmatpush3.bf16.msra.mxu1 %v1439_v11  ;;  %1109 = vmatprep.mubr.msk.bf16.mxu1 %vm1312_vm1, %v1311_v6 }
  0x3e   : > { %1107 = vmatprep.subr.bf16.mxu1 %v1311_v6 }
  0x3f   : > { %1100 = vmatpush3.bf16.msra.mxu0 %v1447_v12 }
  0x40   : > { %1113 = vmatprep.subr.bf16.mxu0 %v1311_v6 }
  0x41   : > { %1108 = vmatpush3.bf16.msra.mxu1 %v1447_v12 }
  0x42   : > { %1102 = vmatmul.mubr.msk.bf16.vlgmr.msra.gmra.mrb[0].mxu0 %vm542_vm3, %v529_v15  ;;  %1121 = vmatprep.subr.bf16.mxu1 %v1311_v6 }
  0x43   : > { %1114 = vmatpush3.bf16.msra.mxu0 %v1439_v11  ;;  %1117 = vmatprep.mubr.msk.bf16.mxu0 %vm1312_vm1, %v1311_v6 }
  0x44   : > { %1115 = vmatprep.subr.bf16.mxu0 %v1311_v6 }
  0x47   : > { %1116 = vmatpush3.bf16.msra.mxu0 %v1447_v12 }
  0xa4   : > { %v598_v33 = vpop.permute.xlu1 %597 }
  0xa8   : > { %v600_v35 = vpop.permute.xlu1 %599 }
 0x115   : > { %v580_v17 = vpop.f32.mrb[0].mxu0 }
 0x116   : > { %v1129_v18 = vadd.f32 %v1463_v16, %v580_v17  ;;  %v1103_v19 = vpop.f32.mrb[1].mxu0 }
 0x117   : > { %v583_v20 = vpop.f32.mrb[2].mxu0 }
 0x118   : > { %1222 = vtanh.f32 %v1129_v18  ;;  %v1130_v21 = vadd.f32 %v1463_v16, %v583_v20  ;;  %v1104_v22 = vpop.f32.mrb[3].mxu0 }
 0x11a   : > { %1224 = vtanh.f32 %v1130_v21 }
 0x122   : > { %v1223_v23 = vpop.eup %1222 }
 0x123   : > { %607 = vrot.lane.b32.xlu0 %v1223_v23, %s1314_s12  ;;  %v591_v25 = vmul.f32 0.5, %v1223_v23 }
 0x124   : > { %v1225_v24 = vpop.eup %1224 }
 0x125   : > { %v593_v26 = vadd.f32 0.5, %v591_v25  ;;  %v592_v27 = vmul.f32 0.5, %v1225_v24 }
 0x127   : > { %609 = vrot.lane.b32.xlu0 %v1225_v24, %s1314_s12  ;;  %v594_v30 = vadd.f32 0.5, %v592_v27  ;;  %v603_v34 = vmul.f32 %v598_v33, %v593_v26 }
 0x129   : > { %v604_v38 = vmul.f32 %v600_v35, %v594_v30 }
 0x195   : > { %v608_v28 = vpop.permute.xlu0 %607 }
 0x196   : > { %v613_v29 = vmul.f32 %v608_v28, %v593_v26 }
 0x198   : > { %617 = vrot.lane.b32.xlu0 %v613_v29, %s1313_s5 }
 0x199   : > { %v610_v31 = vpop.permute.xlu0 %609 }
 0x19a   : > { %v614_v32 = vmul.f32 %v610_v31, %v594_v30 }
 0x19c   : > { %619 = vrot.lane.b32.xlu1 %v614_v32, %s1313_s5 }
 0x20a   : > { %v618_v36 = vpop.permute.xlu0 %617 }
 0x20b   : > { %v623_v37 = vadd.f32 %v618_v36, %v603_v34 }
 0x20d   : > { %1226 = vtanh.f32 %v623_v37 }
 0x20e   : > { %v620_v39 = vpop.permute.xlu1 %619 }
 0x20f   : > { %v624_v40 = vadd.f32 %v620_v39, %v604_v38 }
 0x211   : > { %1228 = vtanh.f32 %v624_v40 }
 0x217   : > { %v1227_v42 = vpop.eup %1226 }
 0x218   : > { %629 = vrot.lane.b32.xlu0 %v1227_v42, %s1314_s12 }
 0x21b   : > { %v1229_v44 = vpop.eup %1228 }
 0x21c   : > { %631 = vrot.lane.b32.xlu1 %v1229_v44, %s1314_s12 }
 0x28a   : > { %v630_v45 = vpop.permute.xlu0 %629 }
 0x28b   : > { %v635_v47 = vmul.f32 %v630_v45, %v593_v26 }
 0x28e   : > { %v632_v46 = vpop.permute.xlu1 %631 }
 0x28f   : > { %v636_v48 = vmul.f32 %v632_v46, %v594_v30 }
 0x291   : > { %v637_v49 = vpack.c.bf16 %v636_v48, %v635_v47 }
 0x293   : > { %639 = vrot.lane.b32.xlu0 %v637_v49, %s1313_s5 }
 0x305   : > { %v640_v50 = vpop.permute.xlu0 %639 }
 0x306   : > { %1110 = vmatmul.mubr.msk.bf16.vlgmr.msra.gmra.mrb[0].mxu1 %vm542_vm3, %v640_v50 }
 0x307   : > { %1122 = vmatpush3.bf16.msra.mxu1 %v1439_v11  ;;  %1125 = vmatprep.mubr.msk.bf16.mxu1 %vm1312_vm1, %v1311_v6 }
 0x308   : > { %1123 = vmatprep.subr.bf16.mxu1 %v1311_v6 }
 0x30b   : > { %1124 = vmatpush3.bf16.msra.mxu1 %v1447_v12 }
 0x3d9   : > { %v678_v51 = vpop.f32.mrb[0].mxu1 }
 0x3da   : > { %v1131_v52 = vadd.f32 %v1463_v16, %v678_v51  ;;  %v1111_v53 = vpop.f32.mrb[1].mxu1 }
 0x3db   : > { %v681_v54 = vpop.f32.mrb[2].mxu1 }
 0x3dc   : > { %1230 = vtanh.f32 %v1131_v52  ;;  %v1132_v55 = vadd.f32 %v1463_v16, %v681_v54  ;;  %v1112_v56 = vpop.f32.mrb[3].mxu1 }
 0x3de   : > { %1232 = vtanh.f32 %v1132_v55 }
 0x3e6   : > { %v1231_v57 = vpop.eup %1230 }
 0x3e7   : > { %697 = vrot.lane.b32.xlu1 %v1231_v57, %s1314_s12  ;;  %v689_v59 = vmul.f32 0.5, %v1231_v57 }
 0x3e8   : > { %v1233_v58 = vpop.eup %1232 }
 0x3e9   : > { %699 = vrot.lane.b32.xlu0 %v1233_v58, %s1314_s12  ;;  %v690_v60 = vmul.f32 0.5, %v1233_v58  ;;  %v691_v61 = vadd.f32 0.5, %v689_v59 }
 0x3eb   : > { %v692_v0 = vadd.f32 0.5, %v690_v60  ;;  %v693_v3 = vmul.f32 %v691_v61, %v623_v37 }
 0x3ed   : > { %v694_v6 = vmul.f32 %v692_v0, %v624_v40 }
 0x459   : > { %v698_v62 = vpop.permute.xlu1 %697 }
 0x45a   : > { %v703_v63 = vmul.f32 %v698_v62, %v691_v61 }
 0x45b   : > { %v700_v1 = vpop.permute.xlu0 %699 }
 0x45c   : > { %v704_v2 = vmul.f32 %v700_v1, %v692_v0  ;;  %707 = vrot.lane.b32.xlu1 %v703_v63, %s1313_s5 }
 0x45e   : > { %709 = vrot.lane.b32.xlu0 %v704_v2, %s1313_s5 }
 0x4ce   : > { %v708_v4 = vpop.permute.xlu1 %707 }
 0x4cf   : > { %v713_v5 = vadd.f32 %v708_v4, %v693_v3 }
 0x4d0   : > { %v710_v7 = vpop.permute.xlu0 %709 }
 0x4d1   : > { %1234 = vtanh.f32 %v713_v5  ;;  %v714_v8 = vadd.f32 %v710_v7, %v694_v6 }
 0x4d3   : > { %1236 = vtanh.f32 %v714_v8 }
 0x4db   : > { %v1235_v9 = vpop.eup %1234 }
 0x4dc   : > { %719 = vrot.lane.b32.xlu1 %v1235_v9, %s1314_s12 }
 0x4dd   : > { %v1237_v10 = vpop.eup %1236 }
 0x4de   : > { %721 = vrot.lane.b32.xlu0 %v1237_v10, %s1314_s12 }
 0x54e   : > { %v720_v11 = vpop.permute.xlu1 %719 }
 0x54f   : > { %v725_v13 = vmul.f32 %v720_v11, %v691_v61 }
 0x550   : > { %v722_v12 = vpop.permute.xlu0 %721 }
 0x551   : > { %v726_v14 = vmul.f32 %v722_v12, %v692_v0 }
 0x553   : > { %v727_v15 = vpack.c.bf16 %v726_v14, %v725_v13 }
 0x555   : > { %729 = vrot.lane.b32.xlu1 %v727_v15, %s1313_s5 }
 0x5c7   : > { %v730_v17 = vpop.permute.xlu1 %729 }
 0x5c8   : > { %1118 = vmatmul.mubr.msk.bf16.vlgmr.msra.gmra.mrb[4].mxu0 %vm542_vm3, %v730_v17 }
 0x69b   : > { %v768_v18 = vpop.f32.mrb[4].mxu0 }
 0x69c   : > { %v1133_v19 = vadd.f32 %v1463_v16, %v768_v18  ;;  %v1119_v20 = vpop.f32.mrb[5].mxu0 }
 0x69d   : > { %v771_v21 = vpop.f32.mrb[6].mxu0 }
 0x69e   : > { %1238 = vtanh.f32 %v1133_v19  ;;  %v1134_v22 = vadd.f32 %v1463_v16, %v771_v21  ;;  %v1120_v23 = vpop.f32.mrb[7].mxu0 }
 0x6a0   : > { %1240 = vtanh.f32 %v1134_v22 }
 0x6a8   : > { %v1239_v24 = vpop.eup %1238 }
 0x6a9   : > { %787 = vrot.lane.b32.xlu0 %v1239_v24, %s1314_s12  ;;  %v779_v26 = vmul.f32 0.5, %v1239_v24 }
 0x6aa   : > { %v1241_v25 = vpop.eup %1240 }
 0x6ab   : > { %789 = vrot.lane.b32.xlu1 %v1241_v25, %s1314_s12  ;;  %v780_v27 = vmul.f32 0.5, %v1241_v25  ;;  %v781_v28 = vadd.f32 0.5, %v779_v26 }
 0x6ad   : > { %v782_v31 = vadd.f32 0.5, %v780_v27  ;;  %v783_v34 = vmul.f32 %v781_v28, %v713_v5 }
 0x6af   : > { %v784_v37 = vmul.f32 %v782_v31, %v714_v8 }
 0x71b   : > { %v788_v29 = vpop.permute.xlu0 %787 }
 0x71c   : > { %v793_v30 = vmul.f32 %v788_v29, %v781_v28 }
 0x71d   : > { %v790_v32 = vpop.permute.xlu1 %789 }
 0x71e   : > { %v794_v33 = vmul.f32 %v790_v32, %v782_v31  ;;  %797 = vrot.lane.b32.xlu0 %v793_v30, %s1313_s5 }
 0x720   : > { %799 = vrot.lane.b32.xlu1 %v794_v33, %s1313_s5 }
 0x790   : > { %v798_v35 = vpop.permute.xlu0 %797 }
 0x791   : > { %v803_v36 = vadd.f32 %v798_v35, %v783_v34 }
 0x792   : > { %v800_v38 = vpop.permute.xlu1 %799 }
 0x793   : > { %1242 = vtanh.f32 %v803_v36  ;;  %v804_v39 = vadd.f32 %v800_v38, %v784_v37 }
 0x795   : > { %1244 = vtanh.f32 %v804_v39 }
 0x79d   : > { %v1243_v40 = vpop.eup %1242 }
 0x79e   : > { %809 = vrot.lane.b32.xlu0 %v1243_v40, %s1314_s12 }
 0x79f   : > { %v1245_v41 = vpop.eup %1244 }
 0x7a0   : > { %811 = vrot.lane.b32.xlu1 %v1245_v41, %s1314_s12 }
 0x810   : > { %v810_v42 = vpop.permute.xlu0 %809 }
 0x811   : > { %v815_v44 = vmul.f32 %v810_v42, %v781_v28 }
 0x812   : > { %v812_v43 = vpop.permute.xlu1 %811 }
 0x813   : > { %v816_v45 = vmul.f32 %v812_v43, %v782_v31 }
 0x815   : > { %v817_v46 = vpack.c.bf16 %v816_v45, %v815_v44 }
 0x817   : > { %819 = vrot.lane.b32.xlu0 %v817_v46, %s1313_s5 }
 0x889   : > { %v820_v47 = vpop.permute.xlu0 %819 }
 0x88a   : > { %1126 = vmatmul.mubr.msk.bf16.vlgmr.msra.gmra.mrb[4].mxu1 %vm542_vm3, %v820_v47 }
 0x95d   : > { %v858_v48 = vpop.f32.mrb[4].mxu1 }
 0x95e   : > { %v1135_v49 = vadd.f32 %v1463_v16, %v858_v48  ;;  %v1127_v50 = vpop.f32.mrb[5].mxu1 }
 0x95f   : > { %v861_v51 = vpop.f32.mrb[6].mxu1 }
 0x960   : > { %1246 = vtanh.f32 %v1135_v49  ;;  %v1136_v52 = vadd.f32 %v1463_v16, %v861_v51  ;;  %v1128_v53 = vpop.f32.mrb[7].mxu1 }
 0x962   : > { %1248 = vtanh.f32 %v1136_v52 }
 0x96a   : > { %v1247_v54 = vpop.eup %1246 }
 0x96b   : > { %877 = vrot.lane.b32.xlu1 %v1247_v54, %s1314_s12  ;;  %v869_v56 = vmul.f32 0.5, %v1247_v54 }
 0x96c   : > { %v1249_v55 = vpop.eup %1248 }
 0x96d   : > { %879 = vrot.lane.b32.xlu0 %v1249_v55, %s1314_s12  ;;  %v870_v57 = vmul.f32 0.5, %v1249_v55  ;;  %v871_v58 = vadd.f32 0.5, %v869_v56 }
 0x96f   : > { %v872_v61 = vadd.f32 0.5, %v870_v57  ;;  %v873_v16 = vmul.f32 %v871_v58, %v803_v36 }
 0x971   : > { %v874_v2 = vmul.f32 %v872_v61, %v804_v39 }
 0x9dd   : > { %v878_v59 = vpop.permute.xlu1 %877 }
 0x9de   : > { %v883_v60 = vmul.f32 %v878_v59, %v871_v58 }
 0x9df   : > { %v880_v62 = vpop.permute.xlu0 %879 }
 0x9e0   : > { %v884_v63 = vmul.f32 %v880_v62, %v872_v61  ;;  %887 = vrot.lane.b32.xlu1 %v883_v60, %s1313_s5 }
 0x9e2   : > { %889 = vrot.lane.b32.xlu0 %v884_v63, %s1313_s5 }
 0xa52   : > { %v888_v0 = vpop.permute.xlu1 %887 }
 0xa53   : > { %v893_v1 = vadd.f32 %v888_v0, %v873_v16 }
 0xa54   : > { %v890_v3 = vpop.permute.xlu0 %889 }
 0xa55   : > { %1250 = vtanh.f32 %v893_v1  ;;  %v894_v4 = vadd.f32 %v890_v3, %v874_v2 }
 0xa57   : > { %1252 = vtanh.f32 %v894_v4 }
 0xa5f   : > { %v1251_v5 = vpop.eup %1250 }
 0xa60   : > { %899 = vrot.lane.b32.xlu1 %v1251_v5, %s1314_s12 }
 0xa61   : > { %v1253_v6 = vpop.eup %1252 }
 0xa62   : > { %901 = vrot.lane.b32.xlu0 %v1253_v6, %s1314_s12 }
 0xad2   : > { %v900_v7 = vpop.permute.xlu1 %899 }
 0xad3   : > { %v905_v8 = vmul.f32 %v900_v7, %v871_v58 }
 0xad4   : > { %v902_v9 = vpop.permute.xlu0 %901 }
 0xad5   : > { %v906_v10 = vmul.f32 %v902_v9, %v872_v61  ;;  %909 = vrot.lane.b32.xlu1 %v905_v8, %s1313_s5 }
 0xad7   : > { %911 = vrot.lane.b32.xlu0 %v906_v10, %s1313_s5 }
 0xad9   : > { %919 = vrot.lane.b32.xlu1 %v893_v1, %s1315_s13 }
 0xadb   : > { %921 = vrot.lane.b32.xlu0 %v894_v4, %s1315_s13 }
 0xb47   : > { %v910_v11 = vpop.permute.xlu1 %909 }
 0xb48   : > { %915 = vst.msk [vmem:[#allocation2] sm:$0xff] %vm542_vm3, %v910_v11  ;;  %930 = sbr.rel (%p1049_p12) target bundleno = 2895 (0xb4f), region = 85  ;;  %931 = vst.msk [vmem:[%s1408_s29] sm:$0xff] (!%p1049_p12), %vm542_vm3, %v910_v11 }
 0xb49   : > { %v912_v12 = vpop.permute.xlu0 %911  ;;  %934 = vst.msk [vmem:[%s1408_s29] sm:$0xff] (!%p1049_p12), %vm933_vm4, %v893_v1 }
 0xb4a   : > { %916 = vst.msk [vmem:[#allocation2 + $0x8] sm:$0xff] %vm542_vm3, %v912_v12  ;;  %932 = vst.msk [vmem:[%s1408_s29 + $0x8] sm:$0xff] (!%p1049_p12), %vm542_vm3, %v912_v12 }
 0xb4b   : > { %v920_v13 = vpop.permute.xlu1 %919  ;;  %935 = vst.msk [vmem:[%s1408_s29 + $0x8] sm:$0xff] (!%p1049_p12), %vm933_vm4, %v894_v4 }
 0xb4c   : > { %925 = vst.msk [vmem:[#allocation3] sm:$0xff] %vm542_vm3, %v920_v13 }
 0xb4d   : > { %v922_v14 = vpop.permute.xlu0 %921 }
 0xb4e   : > { %926 = vst.msk [vmem:[#allocation3 + $0x8] sm:$0xff] %vm542_vm3, %v922_v14 }
 0xb4f PF: > { %s14_s21 = sadd.s32 1, %s1308_s21   ;;  %s1561_s15 = smov %s1288_s16 }
 0xb50   : > { %p11_p13 = scmp.ge.s32.totalorder %s14_s21, 6   ;;  %s1562_s16 = smov %s1392_s28 }
 0xb51   : > { %s1563_s17 = smov %s1300_s19  ;;  %s1564_s18 = smov %s1304_s20 }
 0xb52   : > { %s1565_s19 = smov %s1568_s22  ;;  %s1566_s20 = smov %s1572_s23 }
 0xb53   :  { %13 = sbr.rel (!%p11_p13) target bundleno = 4 (0x4), region = 123 }

</bundles_post_ra>
